<compile_context>
chip_gen: v7x
topology: tpu7x:2x2x1
jax: 0.10.0
libtpu: 0.0.40
codegen_flags: <defaults>
</compile_context>

<pallas_src>
import jax
import jax.numpy as jnp
from jax.experimental import pallas as pl
from jax.experimental.pallas import tpu as pltpu

H = 32              # config.hidden
H2 = 64             # 2*H (GIN MLP hidden)
OUT_LANES = 128     # lane-dense readout width
LAYERS = 2          # config.layers
NUM_TASKS = 1
T = 1.0             # config.T
BN_EPS = 1e-5

ATOM_VOCAB = (5, 4, 3)   # synthetic atom feature vocab sizes (3 feature columns)
BOND_VOCAB = (4, 3)      # synthetic bond feature vocab sizes (2 feature columns)


def _round_up(v, m):
    return (v + m - 1) // m * m


# ----------------------------- fused Pallas kernel ---------------------------

def make_fused_kernel(n_layers, n_nodes):
    """GIN (grid over layers) + mean-pool + graph_pred_linear + beta-softmax."""

    def kernel(eps_ref, scal_ref,                                   # SMEM
               x0_ref, gat_ref, sct_ref, eemb_ref,                  # VMEM inputs
               w1_ref, b1_ref, w2_ref, b2_ref,
               p_ref, invc_ref, wp_ref, bp_ref, mgf_ref,
               o_ref,                                               # VMEM output
               x_scr):                                              # VMEM scratch
        layer = pl.program_id(0)

        @pl.when(layer == 0)
        def _():
            x_scr[...] = x0_ref[...]                                # (Np, H) f32

        x = x_scr[...]
        x_b = x.astype(jnp.bfloat16)

        # ---- message passing on the MXU (one-hot gather / scatter matmuls) --
        xs = jnp.dot(gat_ref[...], x_b,
                     preferred_element_type=jnp.float32)            # (Ep, H)
        msg = jnp.maximum(xs + eemb_ref[0].astype(jnp.float32), 0.0)
        aggr = jnp.dot(sct_ref[...], msg.astype(jnp.bfloat16),
                       preferred_element_type=jnp.float32)          # (Np, H)

        # ---- GIN update: MLP((1+eps)*x + aggr); eval-mode BN folded in w1/b1
        eps = eps_ref[layer]
        pre = (1.0 + eps) * x + aggr
        h1 = jnp.dot(pre.astype(jnp.bfloat16), w1_ref[0],
                     preferred_element_type=jnp.float32) + b1_ref[0]
        h1 = jnp.maximum(h1, 0.0)
        h2 = jnp.dot(h1.astype(jnp.bfloat16), w2_ref[0],
                     preferred_element_type=jnp.float32) + b2_ref[0]

        # Zero padded node rows (biases would otherwise leak through them).
        row = jax.lax.broadcasted_iota(jnp.int32, h2.shape, 0)
        x_scr[...] = jnp.where(row < n_nodes, h2, 0.0)

        # ---- readout on the last layer only ---------------------------------
        @pl.when(layer == n_layers - 1)
        def _():
            nr = x_scr[...]                           # JK='last'; eval dropout=id
            # mean pool: unnormalized bf16 one-hot sum, f32 1/count afterwards.
            hg = jnp.dot(p_ref[...], nr.astype(jnp.bfloat16),
                         preferred_element_type=jnp.float32)        # (Gp, H)
            hg = hg * invc_ref[...]
            logits = (jnp.dot(hg.astype(jnp.bfloat16), wp_ref[...],
                              preferred_element_type=jnp.float32)
                      + bp_ref[...]) * scal_ref[1]                  # (Gp,128) /T
            pred = 1.0 / (1.0 + jnp.exp(-logits))                   # sigmoid
            mgf = mgf_ref[...]
            beta = scal_ref[0]
            s0 = pred * beta
            s1 = mgf * beta
            m = jnp.maximum(s0, s1)
            e0 = jnp.exp(s0 - m)
            e1 = jnp.exp(s1 - m)
            inv_den = 1.0 / (e0 + e1)
            # Full-lane (Gp,128) store; every lane holds the same per-graph value.
            o_ref[...] = pred * (e0 * inv_den) + mgf * (e1 * inv_den)

    return kernel


def fused_forward_call(eps_vec, scal_vec, x0, gat, sct, eemb, w1, b1, w2, b2,
                       p_mat, invcnt, wp, bp, mgf, *, n_layers, n_nodes,
                       n_nodes_pad, n_edges_pad, g_pad):
    smem = pl.BlockSpec(memory_space=pltpu.MemorySpace.SMEM)

    def const2(l):
        return (0, 0)

    def per_layer3(l):
        return (l, 0, 0)

    in_specs = [
        smem, smem,                                                 # eps, scal
        pl.BlockSpec((n_nodes_pad, H), const2),                     # x0
        pl.BlockSpec((n_edges_pad, n_nodes_pad), const2),           # gather 1-hot
        pl.BlockSpec((n_nodes_pad, n_edges_pad), const2),           # scatter 1-hot
        pl.BlockSpec((1, n_edges_pad, H), per_layer3),              # eemb / layer
        pl.BlockSpec((1, H, H2), per_layer3),                       # W1
        pl.BlockSpec((1, 1, H2), per_layer3),                       # B1
        pl.BlockSpec((1, H2, H), per_layer3),                       # W2
        pl.BlockSpec((1, 1, H), per_layer3),                        # B2
        pl.BlockSpec((g_pad, n_nodes_pad), const2),                 # pool 1-hot
        pl.BlockSpec((g_pad, H), const2),                           # 1/counts
        pl.BlockSpec((H, OUT_LANES), const2),                       # wp (bcast)
        pl.BlockSpec((1, OUT_LANES), const2),                       # bp (bcast)
        pl.BlockSpec((g_pad, OUT_LANES), const2),                   # mgf
    ]
    out_spec = pl.BlockSpec((g_pad, OUT_LANES), const2)

    flops = n_layers * (4 * n_edges_pad * n_nodes_pad * H          # gather+scatter
                        + 2 * n_nodes_pad * H * H2
                        + 2 * n_nodes_pad * H2 * H)                # MLP
    flops += 2 * g_pad * n_nodes_pad * H + 2 * g_pad * H * OUT_LANES
    bytes_accessed = sum(int(a.size) * a.dtype.itemsize for a in
                         (eps_vec, scal_vec, x0, gat, sct, eemb, w1, b1, w2, b2,
                          p_mat, invcnt, wp, bp, mgf)) + g_pad * OUT_LANES * 4
    cost = pl.CostEstimate(flops=flops, transcendentals=3 * g_pad * OUT_LANES,
                           bytes_accessed=bytes_accessed)

    kernel = make_fused_kernel(n_layers, n_nodes)

    return pl.pallas_call(
        kernel,
        out_shape=jax.ShapeDtypeStruct((g_pad, OUT_LANES), jnp.float32),
        grid=(n_layers,),
        in_specs=in_specs,
        out_specs=out_spec,
        scratch_shapes=[pltpu.VMEM((n_nodes_pad, H), jnp.float32)],
        cost_estimate=cost,
        compiler_params=pltpu.CompilerParams(
            dimension_semantics=("arbitrary",),
            vmem_limit_bytes=48 * 1024 * 1024),   # safe under v7x's 64 MiB
    )(eps_vec, scal_vec, x0, gat, sct, eemb, w1, b1, w2, b2,
      p_mat, invcnt, wp, bp, mgf)


# ---------------------------- parameter setup --------------------------------

def init_params(key):
    ks = iter(jax.random.split(key, 64))
    params = {}
    params["atom_emb"] = [
        0.1 * jax.random.normal(next(ks), (v, H), jnp.float32) for v in ATOM_VOCAB]
    convs = []
    for _ in range(LAYERS):
        c = {
            "bond_emb": [0.1 * jax.random.normal(next(ks), (v, H), jnp.float32)
                         for v in BOND_VOCAB],
            "w1": 0.1 * jax.random.normal(next(ks), (H, H2), jnp.float32),
            "b1": 0.01 * jax.random.normal(next(ks), (H2,), jnp.float32),
            "gamma": 1.0 + 0.05 * jax.random.normal(next(ks), (H2,), jnp.float32),
            "beta": 0.05 * jax.random.normal(next(ks), (H2,), jnp.float32),
            "mu": 0.05 * jax.random.normal(next(ks), (H2,), jnp.float32),
            "var": 1.0 + 0.1 * jax.random.uniform(next(ks), (H2,), jnp.float32),
            "w2": 0.1 * jax.random.normal(next(ks), (H2, H), jnp.float32),
            "b2": 0.01 * jax.random.normal(next(ks), (H,), jnp.float32),
            "eps": jnp.zeros((), jnp.float32),      # GINConv eps, init 0
        }
        convs.append(c)
    params["convs"] = convs
    params["wp"] = 0.1 * jax.random.normal(next(ks), (H, NUM_TASKS), jnp.float32)
    params["bp"] = 0.01 * jax.random.normal(next(ks), (NUM_TASKS,), jnp.float32)
    params["net_beta"] = jnp.ones((), jnp.float32)  # Net.beta parameter, init 1.0
    return params


def prepare_packed_params(params):
    """Fold eval-mode BN into w1/b1 (exact), stack per-layer, bf16 MXU weights."""
    w1s, b1s, w2s, b2s, epss = [], [], [], [], []
    for c in params["convs"]:
        scale = c["gamma"] * jax.lax.rsqrt(c["var"] + BN_EPS)        # (2H,)
        w1f = c["w1"] * scale[None, :]                               # (H, 2H)
        b1f = (c["b1"] - c["mu"]) * scale + c["beta"]                # (2H,)
        w1s.append(w1f.astype(jnp.bfloat16))
        b1s.append(b1f[None, :].astype(jnp.float32))
        w2s.append(c["w2"].astype(jnp.bfloat16))
        b2s.append(c["b2"][None, :].astype(jnp.float32))
        epss.append(c["eps"])
    wp_b = jnp.broadcast_to(params["wp"][:, 0:1], (H, OUT_LANES)).astype(jnp.bfloat16)
    bp_b = jnp.broadcast_to(params["bp"][0:1], (OUT_LANES,)).reshape(1, OUT_LANES)
    return {
        "W1": jnp.stack(w1s, 0),    # (L, H, 2H) bf16
        "B1": jnp.stack(b1s, 0),    # (L, 1, 2H) f32
        "W2": jnp.stack(w2s, 0),    # (L, 2H, H) bf16
        "B2": jnp.stack(b2s, 0),    # (L, 1, H)  f32
        "EPS": jnp.stack(epss, 0),  # (L,) f32
        "WP": wp_b, "BP": bp_b.astype(jnp.float32),
        "BETA": params["net_beta"],
    }


# ------------------------------ forward pass ----------------------------------

def net_forward(params, packed, x_feats, edge_index, edge_attr, batch, y,
                num_graphs):
    """Mirrors Net.forward (eval, GIN / JK=last / mean pool / no virtual node)."""
    N = x_feats.shape[0]
    E = edge_index.shape[1]
    G = int(num_graphs)                     # static: no device->host sync
    Np = _round_up(max(N, 1), 128)
    Ep = _round_up(max(E, 1), 128)
    Gp = _round_up(max(G, 1), 8)

    # AtomEncoder: sum of per-column embedding lookups (gather glue stays in XLA).
    x = jnp.zeros((N, H), jnp.float32)
    for j, tbl in enumerate(params["atom_emb"]):
        x = x + jnp.take(tbl, x_feats[:, j], axis=0)
    x0 = jnp.zeros((Np, H), jnp.float32).at[:N].set(x)

    # BondEncoder per layer (each layer has its own, as in OGB); bf16, edge-padded.
    eembs = []
    for c in params["convs"]:
        e = jnp.zeros((E, H), jnp.float32)
        for j, tbl in enumerate(c["bond_emb"]):
            e = e + jnp.take(tbl, edge_attr[:, j], axis=0)
        eembs.append(jnp.zeros((Ep, H), jnp.float32).at[:E].set(e))
    eemb = jnp.stack(eembs, 0).astype(jnp.bfloat16)                  # (L, Ep, H)

    src = edge_index[0].astype(jnp.int32)
    dst = edge_index[1].astype(jnp.int32)
    # 0/1 one-hots in bf16 (exact); out-of-range padded indices give zero rows.
    src_pad = jnp.full((Ep,), Np, jnp.int32).at[:E].set(src)
    dst_pad = jnp.full((Ep,), Np, jnp.int32).at[:E].set(dst)
    gat = jax.nn.one_hot(src_pad, Np, dtype=jnp.bfloat16)            # (Ep, Np)
    sct = jax.nn.one_hot(dst_pad, Np, dtype=jnp.bfloat16).T          # (Np, Ep)

    # global_mean_pool: unnormalized 0/1 one-hot (bf16) + f32 1/count post-matmul.
    batch_pad = jnp.full((Np,), Gp, jnp.int32).at[:N].set(batch.astype(jnp.int32))
    p_mat = jax.nn.one_hot(batch_pad, Gp, dtype=jnp.bfloat16).T      # (Gp, Np)
    counts = jnp.zeros((Gp,), jnp.float32).at[batch].add(1.0)
    invcnt = jnp.broadcast_to((1.0 / jnp.maximum(counts, 1.0))[:, None], (Gp, H))

    mgf = jnp.zeros((Gp, OUT_LANES), jnp.float32).at[:G].set(
        jnp.broadcast_to(y[:, 2:3].astype(jnp.float32), (G, OUT_LANES)))

    scal = jnp.stack([packed["BETA"],
                      jnp.asarray(1.0 / T, jnp.float32)]).astype(jnp.float32)

    out_full = fused_forward_call(
        packed["EPS"], scal, x0, gat, sct, eemb,
        packed["W1"], packed["B1"], packed["W2"], packed["B2"],
        p_mat, invcnt, packed["WP"], packed["BP"], mgf,
        n_layers=LAYERS, n_nodes=N, n_nodes_pad=Np, n_edges_pad=Ep, g_pad=Gp)
    return out_full[:G, 0:1]                                         # (G, 1)

# TODO(synk): nodeskip / drop_gnn training-only branches (host-side numpy edge
# rewiring / stochastic node dropout), training-mode dropout/BN, and the
# virtual-node branch are not exercised in this eval, virtual_node='false' config.


# --------------------------------- main ---------------------------------------

if __name__ == "__main__":
    key = jax.random.PRNGKey(0)
    k_param, k_x, k_e, k_y = jax.random.split(key, 4)

    # Small synthetic batch: 2 graphs of 8 nodes each (N=16), ring edges both ways (E=32).
    N_PER_G, G = 8, 2
    N = N_PER_G * G
    params = init_params(k_param)
    packed = prepare_packed_params(params)

    x_feats = jnp.stack(
        [jax.random.randint(jax.random.fold_in(k_x, j), (N,), 0, v)
         for j, v in enumerate(ATOM_VOCAB)], axis=1).astype(jnp.int32)        # (16, 3)

    srcs, dsts = [], []
    for g in range(G):
        base = g * N_PER_G
        for n in range(N_PER_G):
            a, b = base + n, base + (n + 1) % N_PER_G
            srcs += [a, b]
            dsts += [b, a]
    edge_index = jnp.array([srcs, dsts], dtype=jnp.int32)                      # (2, 32)
    E = edge_index.shape[1]

    edge_attr = jnp.stack(
        [jax.random.randint(jax.random.fold_in(k_e, j), (E,), 0, v)
         for j, v in enumerate(BOND_VOCAB)], axis=1).astype(jnp.int32)         # (32, 2)

    batch = jnp.repeat(jnp.arange(G, dtype=jnp.int32), N_PER_G)                # (16,)
    y = jax.random.uniform(k_y, (G, 3), jnp.float32)                           # (2, 3)

    out = net_forward(params, packed, x_feats, edge_index, edge_attr, batch, y,
                      num_graphs=G)
    out = jax.block_until_ready(out)
    assert out.shape == (G, 1) and bool(jnp.all(jnp.isfinite(out)))
    print("KERNEL_OK")
</pallas_src>

<mosaic_0001>
module attributes {stable_mosaic.version = 11 : i64} {
  func.func @kernel(%arg0: i32, %arg1: memref<2xf32, #tpu.memory_space<smem>>, %arg2: memref<2xf32, #tpu.memory_space<smem>>, %arg3: memref<128x32xf32, #tpu.memory_space<vmem>>, %arg4: memref<128x128xbf16, #tpu.memory_space<vmem>>, %arg5: memref<128x128xbf16, #tpu.memory_space<vmem>>, %arg6: memref<1x128x32xbf16, #tpu.memory_space<vmem>>, %arg7: memref<1x32x64xbf16, #tpu.memory_space<vmem>>, %arg8: memref<1x1x64xf32, #tpu.memory_space<vmem>>, %arg9: memref<1x64x32xbf16, #tpu.memory_space<vmem>>, %arg10: memref<1x1x32xf32, #tpu.memory_space<vmem>>, %arg11: memref<8x128xbf16, #tpu.memory_space<vmem>>, %arg12: memref<8x32xf32, #tpu.memory_space<vmem>>, %arg13: memref<32x128xbf16, #tpu.memory_space<vmem>>, %arg14: memref<1x128xf32, #tpu.memory_space<vmem>>, %arg15: memref<8x128xf32, #tpu.memory_space<vmem>>, %arg16: memref<8x128xf32, #tpu.memory_space<vmem>>, %arg17: memref<128x32xf32, #tpu.memory_space<vmem>>) attributes {dimension_semantics = [#tpu.dimension_semantics<arbitrary>], iteration_bounds = array<i64: 2>, scalar_prefetch = 0 : i64, scratch_operands = 1 : i64, tpu.core_type = #tpu.core_type<tc>, window_params = [{transform_indices = @transform_0, window_bounds = array<i64: 2>}, {transform_indices = @transform_1, window_bounds = array<i64: 2>}, {pipeline_mode = #tpu.pipeline_mode<synchronous>, transform_indices = @transform_2, window_bounds = array<i64: 128, 32>}, {pipeline_mode = #tpu.pipeline_mode<synchronous>, transform_indices = @transform_3, window_bounds = array<i64: 128, 128>}, {pipeline_mode = #tpu.pipeline_mode<synchronous>, transform_indices = @transform_4, window_bounds = array<i64: 128, 128>}, {transform_indices = @transform_5, window_bounds = array<i64: 1, 128, 32>}, {transform_indices = @transform_6, window_bounds = array<i64: 1, 32, 64>}, {transform_indices = @transform_7, window_bounds = array<i64: 1, 1, 64>}, {transform_indices = @transform_8, window_bounds = array<i64: 1, 64, 32>}, {transform_indices = @transform_9, window_bounds = array<i64: 1, 1, 32>}, {pipeline_mode = #tpu.pipeline_mode<synchronous>, transform_indices = @transform_10, window_bounds = array<i64: 8, 128>}, {pipeline_mode = #tpu.pipeline_mode<synchronous>, transform_indices = @transform_11, window_bounds = array<i64: 8, 32>}, {pipeline_mode = #tpu.pipeline_mode<synchronous>, transform_indices = @transform_12, window_bounds = array<i64: 32, 128>}, {pipeline_mode = #tpu.pipeline_mode<synchronous>, transform_indices = @transform_13, window_bounds = array<i64: 1, 128>}, {pipeline_mode = #tpu.pipeline_mode<synchronous>, transform_indices = @transform_14, window_bounds = array<i64: 8, 128>}, {pipeline_mode = #tpu.pipeline_mode<synchronous>, transform_indices = @transform_15, window_bounds = array<i64: 8, 128>}]} {
    %c0_i32 = arith.constant 0 : i32
    %0 = arith.cmpi eq, %arg0, %c0_i32 : i32
    %1 = arith.extui %0 : i1 to i32
    %c0_i32_0 = arith.constant 0 : i32
    %2 = arith.cmpi ne, %1, %c0_i32_0 : i32
    scf.if %2 {
      %c0_31 = arith.constant 0 : index
      %c0_32 = arith.constant 0 : index
      %49 = vector.load %arg3[%c0_31, %c0_32] : memref<128x32xf32, #tpu.memory_space<vmem>>, vector<128x32xf32>
      %c0_33 = arith.constant 0 : index
      %c0_34 = arith.constant 0 : index
      %50 = vector.load %arg17[%c0_33, %c0_34] : memref<128x32xf32, #tpu.memory_space<vmem>>, vector<128x32xf32>
      tpu.vector_store %arg17[%c0_33, %c0_34], %49 {strides = array<i32>} : memref<128x32xf32, #tpu.memory_space<vmem>>, vector<128x32xf32>,
    } else {
    }
    %c0 = arith.constant 0 : index
    %c0_1 = arith.constant 0 : index
    %3 = vector.load %arg17[%c0, %c0_1] : memref<128x32xf32, #tpu.memory_space<vmem>>, vector<128x32xf32>
    %4 = arith.truncf %3 : vector<128x32xf32> to vector<128x32xbf16>
    %c0_2 = arith.constant 0 : index
    %c0_3 = arith.constant 0 : index
    %5 = vector.load %arg4[%c0_2, %c0_3] : memref<128x128xbf16, #tpu.memory_space<vmem>>, vector<128x128xbf16>
    %cst = arith.constant dense<0.000000e+00> : vector<128x32xf32>
    %6 = tpu.matmul %5, %4, %cst {dimension_numbers = #tpu.dot_dimension_numbers<[1], [0], [0], [1], [0, 0, 1, 1], [], []>} : vector<128x128xbf16>, vector<128x32xbf16>, vector<128x32xf32> -> vector<128x32xf32>
    %c0_4 = arith.constant 0 : index
    %c0_5 = arith.constant 0 : index
    %c0_6 = arith.constant 0 : index
    %7 = vector.load %arg6[%c0_4, %c0_5, %c0_6] : memref<1x128x32xbf16, #tpu.memory_space<vmem>>, vector<1x128x32xbf16>
    %8 = vector.shape_cast %7 : vector<1x128x32xbf16> to vector<128x32xbf16>
    %9 = arith.extf %8 : vector<128x32xbf16> to vector<128x32xf32>
    %10 = arith.addf %6, %9 : vector<128x32xf32>
    %cst_7 = arith.constant 0.000000e+00 : f32
    %11 = vector.broadcast %cst_7 : f32 to vector<128x32xf32>
    %12 = arith.maximumf %10, %11 : vector<128x32xf32>
    %c0_8 = arith.constant 0 : index
    %c0_9 = arith.constant 0 : index
    %13 = vector.load %arg5[%c0_8, %c0_9] : memref<128x128xbf16, #tpu.memory_space<vmem>>, vector<128x128xbf16>
    %14 = arith.truncf %12 : vector<128x32xf32> to vector<128x32xbf16>
    %cst_10 = arith.constant dense<0.000000e+00> : vector<128x32xf32>
    %15 = tpu.matmul %13, %14, %cst_10 {dimension_numbers = #tpu.dot_dimension_numbers<[1], [0], [0], [1], [0, 0, 1, 1], [], []>} : vector<128x128xbf16>, vector<128x32xbf16>, vector<128x32xf32> -> vector<128x32xf32>
    %16 = arith.index_cast %arg0 : i32 to index
    %17 = memref.load %arg1[%16] : memref<2xf32, #tpu.memory_space<smem>>
    %cst_11 = arith.constant 1.000000e+00 : f32
    %18 = arith.addf %cst_11, %17 : f32
    %19 = vector.broadcast %18 : f32 to vector<128x32xf32>
    %20 = arith.mulf %19, %3 : vector<128x32xf32>
    %21 = arith.addf %20, %15 : vector<128x32xf32>
    %22 = arith.truncf %21 : vector<128x32xf32> to vector<128x32xbf16>
    %c0_12 = arith.constant 0 : index
    %c0_13 = arith.constant 0 : index
    %c0_14 = arith.constant 0 : index
    %23 = vector.load %arg7[%c0_12, %c0_13, %c0_14] : memref<1x32x64xbf16, #tpu.memory_space<vmem>>, vector<1x32x64xbf16>
    %24 = vector.shape_cast %23 : vector<1x32x64xbf16> to vector<32x64xbf16>
    %cst_15 = arith.constant dense<0.000000e+00> : vector<128x64xf32>
    %25 = tpu.matmul %22, %24, %cst_15 {dimension_numbers = #tpu.dot_dimension_numbers<[1], [0], [0], [1], [0, 0, 1, 1], [], []>} : vector<128x32xbf16>, vector<32x64xbf16>, vector<128x64xf32> -> vector<128x64xf32>
    %c0_16 = arith.constant 0 : index
    %c0_17 = arith.constant 0 : index
    %c0_18 = arith.constant 0 : index
    %26 = vector.load %arg8[%c0_16, %c0_17, %c0_18] : memref<1x1x64xf32, #tpu.memory_space<vmem>>, vector<1x1x64xf32>
    %27 = vector.shape_cast %26 : vector<1x1x64xf32> to vector<1x64xf32>
    %28 = vector.broadcast %27 : vector<1x64xf32> to vector<128x64xf32>
    %29 = arith.addf %25, %28 : vector<128x64xf32>
    %cst_19 = arith.constant 0.000000e+00 : f32
    %30 = vector.broadcast %cst_19 : f32 to vector<128x64xf32>
    %31 = arith.maximumf %29, %30 : vector<128x64xf32>
    %32 = arith.truncf %31 : vector<128x64xf32> to vector<128x64xbf16>
    %c0_20 = arith.constant 0 : index
    %c0_21 = arith.constant 0 : index
    %c0_22 = arith.constant 0 : index
    %33 = vector.load %arg9[%c0_20, %c0_21, %c0_22] : memref<1x64x32xbf16, #tpu.memory_space<vmem>>, vector<1x64x32xbf16>
    %34 = vector.shape_cast %33 : vector<1x64x32xbf16> to vector<64x32xbf16>
    %cst_23 = arith.constant dense<0.000000e+00> : vector<128x32xf32>
    %35 = tpu.matmul %32, %34, %cst_23 {dimension_numbers = #tpu.dot_dimension_numbers<[1], [0], [0], [1], [0, 0, 1, 1], [], []>} : vector<128x64xbf16>, vector<64x32xbf16>, vector<128x32xf32> -> vector<128x32xf32>
    %c0_24 = arith.constant 0 : index
    %c0_25 = arith.constant 0 : index
    %c0_26 = arith.constant 0 : index
    %36 = vector.load %arg10[%c0_24, %c0_25, %c0_26] : memref<1x1x32xf32, #tpu.memory_space<vmem>>, vector<1x1x32xf32>
    %37 = vector.shape_cast %36 : vector<1x1x32xf32> to vector<1x32xf32>
    %38 = vector.broadcast %37 : vector<1x32xf32> to vector<128x32xf32>
    %39 = arith.addf %35, %38 : vector<128x32xf32>
    %40 = tpu.iota {dimensions = array<i32: 0>} : vector<128x32xi32>
    %c16_i32 = arith.constant 16 : i32
    %41 = vector.broadcast %c16_i32 : i32 to vector<128x32xi32>
    %42 = arith.cmpi slt, %40, %41 : vector<128x32xi32>
    %cst_27 = arith.constant 0.000000e+00 : f32
    %43 = vector.broadcast %cst_27 : f32 to vector<128x32xf32>
    %44 = arith.select %42, %39, %43 : vector<128x32xi1>, vector<128x32xf32>
    %c0_28 = arith.constant 0 : index
    %c0_29 = arith.constant 0 : index
    %45 = vector.load %arg17[%c0_28, %c0_29] : memref<128x32xf32, #tpu.memory_space<vmem>>, vector<128x32xf32>
    tpu.vector_store %arg17[%c0_28, %c0_29], %44 {strides = array<i32>} : memref<128x32xf32, #tpu.memory_space<vmem>>, vector<128x32xf32>,
    %c1_i32 = arith.constant 1 : i32
    %46 = arith.cmpi eq, %arg0, %c1_i32 : i32
    %47 = arith.extui %46 : i1 to i32
    %c0_i32_30 = arith.constant 0 : i32
    %48 = arith.cmpi ne, %47, %c0_i32_30 : i32
    scf.if %48 {
      %c0_31 = arith.constant 0 : index
      %c0_32 = arith.constant 0 : index
      %49 = vector.load %arg17[%c0_31, %c0_32] : memref<128x32xf32, #tpu.memory_space<vmem>>, vector<128x32xf32>
      %c0_33 = arith.constant 0 : index
      %c0_34 = arith.constant 0 : index
      %50 = vector.load %arg11[%c0_33, %c0_34] : memref<8x128xbf16, #tpu.memory_space<vmem>>, vector<8x128xbf16>
      %51 = arith.truncf %49 : vector<128x32xf32> to vector<128x32xbf16>
      %cst_35 = arith.constant dense<0.000000e+00> : vector<8x32xf32>
      %52 = tpu.matmul %50, %51, %cst_35 {dimension_numbers = #tpu.dot_dimension_numbers<[1], [0], [0], [1], [0, 0, 1, 1], [], []>} : vector<8x128xbf16>, vector<128x32xbf16>, vector<8x32xf32> -> vector<8x32xf32>
      %c0_36 = arith.constant 0 : index
      %c0_37 = arith.constant 0 : index
      %53 = vector.load %arg12[%c0_36, %c0_37] : memref<8x32xf32, #tpu.memory_space<vmem>>, vector<8x32xf32>
      %54 = arith.mulf %52, %53 : vector<8x32xf32>
      %55 = arith.truncf %54 : vector<8x32xf32> to vector<8x32xbf16>
      %c0_38 = arith.constant 0 : index
      %c0_39 = arith.constant 0 : index
      %56 = vector.load %arg13[%c0_38, %c0_39] : memref<32x128xbf16, #tpu.memory_space<vmem>>, vector<32x128xbf16>
      %cst_40 = arith.constant dense<0.000000e+00> : vector<8x128xf32>
      %57 = tpu.matmul %55, %56, %cst_40 {dimension_numbers = #tpu.dot_dimension_numbers<[1], [0], [0], [1], [0, 0, 1, 1], [], []>} : vector<8x32xbf16>, vector<32x128xbf16>, vector<8x128xf32> -> vector<8x128xf32>
      %c0_41 = arith.constant 0 : index
      %c0_42 = arith.constant 0 : index
      %58 = vector.load %arg14[%c0_41, %c0_42] : memref<1x128xf32, #tpu.memory_space<vmem>>, vector<1x128xf32>
      %59 = vector.broadcast %58 : vector<1x128xf32> to vector<8x128xf32>
      %60 = arith.addf %57, %59 : vector<8x128xf32>
      %c1 = arith.constant 1 : index
      %61 = memref.load %arg2[%c1] : memref<2xf32, #tpu.memory_space<smem>>
      %62 = vector.broadcast %61 : f32 to vector<8x128xf32>
      %63 = arith.mulf %60, %62 : vector<8x128xf32>
      %cst_43 = arith.constant 0.000000e+00 : f32
      %64 = vector.broadcast %cst_43 : f32 to vector<8x128xf32>
      %65 = arith.subf %64, %63 : vector<8x128xf32>
      %66 = math.exp %65 : vector<8x128xf32>
      %cst_44 = arith.constant 1.000000e+00 : f32
      %67 = vector.broadcast %cst_44 : f32 to vector<8x128xf32>
      %68 = arith.addf %67, %66 : vector<8x128xf32>
      %cst_45 = arith.constant 1.000000e+00 : f32
      %69 = vector.broadcast %cst_45 : f32 to vector<8x128xf32>
      %70 = arith.divf %69, %68 : vector<8x128xf32>
      %c0_46 = arith.constant 0 : index
      %c0_47 = arith.constant 0 : index
      %71 = vector.load %arg15[%c0_46, %c0_47] : memref<8x128xf32, #tpu.memory_space<vmem>>, vector<8x128xf32>
      %c0_48 = arith.constant 0 : index
      %72 = memref.load %arg2[%c0_48] : memref<2xf32, #tpu.memory_space<smem>>
      %73 = vector.broadcast %72 : f32 to vector<8x128xf32>
      %74 = arith.mulf %70, %73 : vector<8x128xf32>
      %75 = vector.broadcast %72 : f32 to vector<8x128xf32>
      %76 = arith.mulf %71, %75 : vector<8x128xf32>
      %77 = arith.maximumf %74, %76 : vector<8x128xf32>
      %78 = arith.subf %74, %77 : vector<8x128xf32>
      %79 = math.exp %78 : vector<8x128xf32>
      %80 = arith.subf %76, %77 : vector<8x128xf32>
      %81 = math.exp %80 : vector<8x128xf32>
      %82 = arith.addf %79, %81 : vector<8x128xf32>
      %cst_49 = arith.constant 1.000000e+00 : f32
      %83 = vector.broadcast %cst_49 : f32 to vector<8x128xf32>
      %84 = arith.divf %83, %82 : vector<8x128xf32>
      %85 = arith.mulf %79, %84 : vector<8x128xf32>
      %86 = arith.mulf %70, %85 : vector<8x128xf32>
      %87 = arith.mulf %81, %84 : vector<8x128xf32>
      %88 = arith.mulf %71, %87 : vector<8x128xf32>
      %89 = arith.addf %86, %88 : vector<8x128xf32>
      %c0_50 = arith.constant 0 : index
      %c0_51 = arith.constant 0 : index
      %90 = vector.load %arg16[%c0_50, %c0_51] : memref<8x128xf32, #tpu.memory_space<vmem>>, vector<8x128xf32>
      tpu.vector_store %arg16[%c0_50, %c0_51], %89 {strides = array<i32>} : memref<8x128xf32, #tpu.memory_space<vmem>>, vector<8x128xf32>,
    } else {
    }
    return
  }
  func.func @transform_0(%arg0: i32) -> i32 {
    %c0_i32 = arith.constant 0 : i32
    %c0_i32_0 = arith.constant 0 : i32
    return %c0_i32 : i32
  }
  func.func @transform_1(%arg0: i32) -> i32 {
    %c0_i32 = arith.constant 0 : i32
    %c0_i32_0 = arith.constant 0 : i32
    return %c0_i32 : i32
  }
  func.func @transform_2(%arg0: i32) -> (i32, i32) {
    %c0_i32 = arith.constant 0 : i32
    %c0_i32_0 = arith.constant 0 : i32
    %c0_i32_1 = arith.constant 0 : i32
    return %c0_i32, %c0_i32_0 : i32, i32
  }
  func.func @transform_3(%arg0: i32) -> (i32, i32) {
    %c0_i32 = arith.constant 0 : i32
    %c0_i32_0 = arith.constant 0 : i32
    %c0_i32_1 = arith.constant 0 : i32
    return %c0_i32, %c0_i32_0 : i32, i32
  }
  func.func @transform_4(%arg0: i32) -> (i32, i32) {
    %c0_i32 = arith.constant 0 : i32
    %c0_i32_0 = arith.constant 0 : i32
    %c0_i32_1 = arith.constant 0 : i32
    return %c0_i32, %c0_i32_0 : i32, i32
  }
  func.func @transform_5(%arg0: i32) -> (i32, i32, i32) {
    %c0_i32 = arith.constant 0 : i32
    %c0_i32_0 = arith.constant 0 : i32
    %c0_i32_1 = arith.constant 0 : i32
    return %arg0, %c0_i32, %c0_i32_0 : i32, i32, i32
  }
  func.func @transform_6(%arg0: i32) -> (i32, i32, i32) {
    %c0_i32 = arith.constant 0 : i32
    %c0_i32_0 = arith.constant 0 : i32
    %c0_i32_1 = arith.constant 0 : i32
    return %arg0, %c0_i32, %c0_i32_0 : i32, i32, i32
  }
  func.func @transform_7(%arg0: i32) -> (i32, i32, i32) {
    %c0_i32 = arith.constant 0 : i32
    %c0_i32_0 = arith.constant 0 : i32
    %c0_i32_1 = arith.constant 0 : i32
    return %arg0, %c0_i32, %c0_i32_0 : i32, i32, i32
  }
  func.func @transform_8(%arg0: i32) -> (i32, i32, i32) {
    %c0_i32 = arith.constant 0 : i32
    %c0_i32_0 = arith.constant 0 : i32
    %c0_i32_1 = arith.constant 0 : i32
    return %arg0, %c0_i32, %c0_i32_0 : i32, i32, i32
  }
  func.func @transform_9(%arg0: i32) -> (i32, i32, i32) {
    %c0_i32 = arith.constant 0 : i32
    %c0_i32_0 = arith.constant 0 : i32
    %c0_i32_1 = arith.constant 0 : i32
    return %arg0, %c0_i32, %c0_i32_0 : i32, i32, i32
  }
  func.func @transform_10(%arg0: i32) -> (i32, i32) {
    %c0_i32 = arith.constant 0 : i32
    %c0_i32_0 = arith.constant 0 : i32
    %c0_i32_1 = arith.constant 0 : i32
    return %c0_i32, %c0_i32_0 : i32, i32
  }
  func.func @transform_11(%arg0: i32) -> (i32, i32) {
    %c0_i32 = arith.constant 0 : i32
    %c0_i32_0 = arith.constant 0 : i32
    %c0_i32_1 = arith.constant 0 : i32
    return %c0_i32, %c0_i32_0 : i32, i32
  }
  func.func @transform_12(%arg0: i32) -> (i32, i32) {
    %c0_i32 = arith.constant 0 : i32
    %c0_i32_0 = arith.constant 0 : i32
    %c0_i32_1 = arith.constant 0 : i32
    return %c0_i32, %c0_i32_0 : i32, i32
  }
  func.func @transform_13(%arg0: i32) -> (i32, i32) {
    %c0_i32 = arith.constant 0 : i32
    %c0_i32_0 = arith.constant 0 : i32
    %c0_i32_1 = arith.constant 0 : i32
    return %c0_i32, %c0_i32_0 : i32, i32
  }
  func.func @transform_14(%arg0: i32) -> (i32, i32) {
    %c0_i32 = arith.constant 0 : i32
    %c0_i32_0 = arith.constant 0 : i32
    %c0_i32_1 = arith.constant 0 : i32
    return %c0_i32, %c0_i32_0 : i32, i32
  }
  func.func @transform_15(%arg0: i32) -> (i32, i32) {
    %c0_i32 = arith.constant 0 : i32
    %c0_i32_0 = arith.constant 0 : i32
    %c0_i32_1 = arith.constant 0 : i32
    return %c0_i32, %c0_i32_0 : i32, i32
  }
}

</mosaic_0001>

<bundles_post_ra>
// kernel: tpu_custom_call.1
= control target key start
LH: loop header
LB: loop body
LE: loop exit
PB: predicated region body
PF: predicated region fallthrough
CT: control target
= control target key end

     0   :  { %s2633_s0 = inlined_call_operand.vmem [shape: f32[2], index: 0, kind: input, shape index: {}]   ;;  %s2634_s1 = inlined_call_operand.vmem [shape: f32[2], index: 1, kind: input, shape index: {}]   ;;  %s2635_s2 = inlined_call_operand.vmem [shape: f32[128,32], index: 2, kind: input, shape index: {}]   ;;  %s2636_s3 = inlined_call_operand.vmem [shape: bf16[128,128], index: 3, kind: input, shape index: {}]   ;;  %s2637_s4 = inlined_call_operand.vmem [shape: bf16[128,128], index: 4, kind: input, shape index: {}]   ;;  %s2638_s5 = inlined_call_operand.vmem [shape: bf16[2,128,32], index: 5, kind: input, shape index: {}]   ;;  %s2639_s6 = inlined_call_operand.vmem [shape: bf16[2,32,64], index: 6, kind: input, shape index: {}]   ;;  %s2640_s7 = inlined_call_operand.vmem [shape: f32[2,1,64], index: 7, kind: input, shape index: {}]   ;;  %s2641_s8 = inlined_call_operand.vmem [shape: bf16[2,64,32], index: 8, kind: input, shape index: {}]   ;;  %s2642_s9 = inlined_call_operand.vmem [shape: f32[2,1,32], index: 9, kind: input, shape index: {}]   ;;  %s2643_s10 = inlined_call_operand.vmem [shape: bf16[8,128], index: 10, kind: input, shape index: {}]   ;;  %s2644_s11 = inlined_call_operand.vmem [shape: f32[8,32], index: 11, kind: input, shape index: {}]   ;;  %s2645_s12 = inlined_call_operand.vmem [shape: bf16[32,128], index: 12, kind: input, shape index: {}]   ;;  %s2646_s13 = inlined_call_operand.vmem [shape: f32[1,128], index: 13, kind: input, shape index: {}]   ;;  %s2647_s14 = inlined_call_operand.vmem [shape: f32[8,128], index: 14, kind: input, shape index: {}]   ;;  %s2648_s15 = inlined_call_operand.hbm [shape: f32[8,128], index: 15, kind: output, shape index: {}]  }
   0x1   :  { %2653 = sst [smem:[#allocation13_spill]] %s2633_s0 }
   0x2   :  { %2654 = sst [smem:[#allocation14_spill]] %s2634_s1 }
   0x3   :  { %2655 = sst [smem:[#allocation15_spill]] %s2647_s14 }
   0x4   :  { %2656 = sst [smem:[#allocation16_spill]] %s2648_s15 }
   0x5   :  { %20 = vsyncpa [#allocation5], 0 }
   0x6   :  { %21 = vsyncpa [#allocation7], 0 }
   0x7   :  { %22 = vsyncpa [#allocation4], 0  ;;  %s2276_s18 = smov 0  }
   0x8 LB: > { %2657 = sst [smem:[#allocation12_spill]] %s2188_s18  ;;  %s2282_s19 = sadd.s32 4294967295, %s2188_s18   ;;  %s2188_s18 = sphi %s2276_s18, %s28_s18  }
   0x9   : > { %p1733_p0 = scmp.ge.s32.totalorder %s2188_s18, 1  ;;  %p394_p1 = scmp.lt.s32.totalorder %s2188_s18, 3 }
   0xa   : > { %s2658_s0 = sld [smem:[#allocation13_spill]]  ;;  %p2649_p4 = scmp.eq.s32.totalorder %s2282_s19, 0 }
   0xb   : > { %p2290_p3 = pnand %p1733_p0, %p394_p1  ;;  %s2660_s1 = sld [smem:[#allocation14_spill]] }
   0xd   : > { %s2659_s23 = scalar_select %p2290_p3, 1, 0 }
   0xe   : > { %p2053_p5 = pneg %p2290_p3 }
  0x10   : > { %s407_s22 = sshll.u32 %s2658_s0, 4  ;;  %p2302_p6 = pnand %p2649_p4, %p2053_p5  ;;  %s408_s22 = int_to_ptr.vmem [resolvable:$true] %s407_s22 }
  0x11   : > { %s418_s26 = sshll.u32 %s2660_s1, 4  ;;  %s2114_s28 = scalar_lea.vmem %s408_s22, 16  ;;  %s419_s26 = int_to_ptr.vmem [resolvable:$true] %s418_s26 }
  0x12   : > { %p2115_p7 = scmp.ne.s32.totalorder %s408_s22, %s2114_s28  ;;  %p2116_p8 = pneg %p2302_p6 }
  0x13   : > { %p2122_p11 = scmp.lt.s32.totalorder %s408_s22, %s408_s22  ;;  %p2123_p12 = scmp.lt.s32.totalorder %s2114_s28, %s2114_s28 }
  0x14   : > { %p2117_p9 = pnand %p2116_p8, %p2115_p7 }
  0x15   : > { %p2124_p13 = por %p2123_p12, %p2122_p11 }
  0x16   : > { %p2118_p10 = pneg %p2117_p9 }
  0x18   : > { %p2125_p0 = pnand %p2124_p13, %p2118_p10 }
  0x1a   : > { %2128 = shalt.err (!%p2125_p0)
}
  0x1b   : > { %s2190_s29 = smov [#allocation3]   ;;  %s2129_s30 = scalar_lea.vmem %s419_s26, 16 }
  0x1c   : > { %2056 = dma.vmem_to_smem (!%p2302_p6), %s408_s22, 16, %s2190_s29, [#allocation5]  }
  0x1d   : > { %p2130_p1 = scmp.ne.s32.totalorder %s419_s26, %s2129_s30  ;;  %p2137_p4 = scmp.lt.s32.totalorder %s419_s26, %s419_s26 }
  0x1e   : > { %p2138_p3 = scmp.lt.s32.totalorder %s2129_s30, %s2129_s30 }
  0x1f   : > { %p2132_p5 = pnand %p2130_p1, %p2116_p8 }
  0x20   : > { %p2139_p7 = por %p2138_p3, %p2137_p4 }
  0x21   : > { %p2133_p2 = pneg %p2132_p5 }
  0x23   : > { %p2140_p9 = pnand %p2139_p7, %p2133_p2 }
  0x25   : > { %2143 = shalt.err (!%p2140_p9)
}
  0x26   : > { %s2191_s16 = smov [#allocation6]   ;;  %p2662_p10 = scmp.ne.s32.totalorder %s2659_s23, 0 }
  0x27   : > { %2059 = dma.vmem_to_smem (!%p2302_p6), %s419_s26, 16, %s2191_s16, [#allocation7]  }
  0x28   : > { %491 = sbr.rel (%p2662_p10) target bundleno = 1584 (0x630), region = 80  ;;  %p2663_p11 = scmp.eq.s32.totalorder (!%p2662_p10), %s2282_s19, 0 }
  0x2f   : > { %2175 = dma.done.wait (%p2663_p11), [#allocation5], 16   ;;  %p2664_p12 = pmov %p2663_p11 }
  0x30   : > { %p2665_p8 = pmov %p2663_p11 }
  0x31   : > { %2177 = vsyncadd (%p2664_p12), [#allocation5], 4294967280 }
  0x32   : > { %2179 = dma.done.wait (%p2665_p8), [#allocation7], 16   ;;  %p2666_p3 = pmov %p2665_p8 }
  0x34   : > { %2181 = vsyncadd (%p2666_p3), [#allocation7], 4294967280 }
  0x35   : > { %501 = sfence }
  0x36   : > { %p555_p2 = scmp.lt.s32.totalorder %s2282_s19, 1  ;;  %p2667_p4 = scmp.ne.s32.totalorder %s2282_s19, 0 }
  0x37   : > { %v581_v0 = vld [vmem:[%s2635_s2] sm:$0xff] (!%p2667_p4)  ;;  %vm597_vm0 = vcmask (!%p2667_p4), 261120   ;;  %v582_v1 = vld [vmem:[%s2635_s2 + $0x8] sm:$0xff] (!%p2667_p4)  ;;  %v583_v2 = vld [vmem:[%s2635_s2 + $0x10] sm:$0xff] (!%p2667_p4) }
  0x38   : > { %s2324_s17 = scalar_select %p555_p2, %s2282_s19, 1 }
  0x39   : > { %580 = sbr.rel (%p2667_p4) target bundleno = 65 (0x41), region = 92  ;;  %598 = vst.msk [vmem:[#allocation2] sm:$0xff] (!%p2667_p4), %vm597_vm0, %v581_v0  ;;  %599 = vst.msk [vmem:[#allocation2 + $0x8] sm:$0xff] (!%p2667_p4), %vm597_vm0, %v582_v1  ;;  %v584_v3 = vld [vmem:[%s2635_s2 + $0x18] sm:$0xff] (!%p2667_p4)  ;;  %v585_v4 = vld [vmem:[%s2635_s2 + $0x20] sm:$0xff] (!%p2667_p4) }
  0x3a   : > { %s1797_s20 = sshll.u32 %s2324_s17, 6  ;;  %s1798_s21 = sshll.u32 %s2324_s17, 4  ;;  %600 = vst.msk [vmem:[#allocation2 + $0x10] sm:$0xff] (!%p2667_p4), %vm597_vm0, %v583_v2  ;;  %v586_v5 = vld [vmem:[%s2635_s2 + $0x28] sm:$0xff] (!%p2667_p4)  ;;  %601 = vst.msk [vmem:[#allocation2 + $0x18] sm:$0xff] (!%p2667_p4), %vm597_vm0, %v584_v3  ;;  %v587_v6 = vld [vmem:[%s2635_s2 + $0x30] sm:$0xff] (!%p2667_p4) }
  0x3b   : > { %s2331_s24 = scalar_lea.vmem %s2638_s5, %s1797_s20  ;;  %s2336_s27 = scalar_lea.vmem %s2639_s6, %s1798_s21  ;;  %602 = vst.msk [vmem:[#allocation2 + $0x20] sm:$0xff] (!%p2667_p4), %vm597_vm0, %v585_v4  ;;  %603 = vst.msk [vmem:[#allocation2 + $0x28] sm:$0xff] (!%p2667_p4), %vm597_vm0, %v586_v5  ;;  %v588_v7 = vld [vmem:[%s2635_s2 + $0x38] sm:$0xff] (!%p2667_p4)  ;;  %v589_v8 = vld [vmem:[%s2635_s2 + $0x40] sm:$0xff] (!%p2667_p4) }
  0x3c   : > { %s567_s30 = scalar_lea.vmem %s2640_s7, %s2324_s17  ;;  %s1799_s16 = sshll.u32 %s2324_s17, 5  ;;  %604 = vst.msk [vmem:[#allocation2 + $0x30] sm:$0xff] (!%p2667_p4), %vm597_vm0, %v587_v6  ;;  %605 = vst.msk [vmem:[#allocation2 + $0x38] sm:$0xff] (!%p2667_p4), %vm597_vm0, %v588_v7  ;;  %v590_v9 = vld [vmem:[%s2635_s2 + $0x48] sm:$0xff] (!%p2667_p4)  ;;  %v591_v10 = vld [vmem:[%s2635_s2 + $0x50] sm:$0xff] (!%p2667_p4) }
  0x3d   : > { %s2346_s18 = scalar_lea.vmem %s2641_s8, %s1799_s16  ;;  %s575_s20 = scalar_lea.vmem %s2642_s9, %s2324_s17  ;;  %606 = vst.msk [vmem:[#allocation2 + $0x40] sm:$0xff] (!%p2667_p4), %vm597_vm0, %v589_v8  ;;  %v592_v11 = vld [vmem:[%s2635_s2 + $0x58] sm:$0xff] (!%p2667_p4)  ;;  %607 = vst.msk [vmem:[#allocation2 + $0x48] sm:$0xff] (!%p2667_p4), %vm597_vm0, %v590_v9  ;;  %v593_v12 = vld [vmem:[%s2635_s2 + $0x60] sm:$0xff] (!%p2667_p4) }
  0x3e   : > { %608 = vst.msk [vmem:[#allocation2 + $0x50] sm:$0xff] (!%p2667_p4), %vm597_vm0, %v591_v10  ;;  %609 = vst.msk [vmem:[#allocation2 + $0x58] sm:$0xff] (!%p2667_p4), %vm597_vm0, %v592_v11  ;;  %v594_v13 = vld [vmem:[%s2635_s2 + $0x68] sm:$0xff] (!%p2667_p4)  ;;  %v595_v14 = vld [vmem:[%s2635_s2 + $0x70] sm:$0xff] (!%p2667_p4) }
  0x3f   : > { %610 = vst.msk [vmem:[#allocation2 + $0x60] sm:$0xff] (!%p2667_p4), %vm597_vm0, %v593_v12  ;;  %611 = vst.msk [vmem:[#allocation2 + $0x68] sm:$0xff] (!%p2667_p4), %vm597_vm0, %v594_v13  ;;  %v596_v15 = vld [vmem:[%s2635_s2 + $0x78] sm:$0xff] (!%p2667_p4) }
  0x40   : > { %612 = vst.msk [vmem:[#allocation2 + $0x70] sm:$0xff] %vm597_vm0, %v595_v14  ;;  %613 = vst.msk [vmem:[#allocation2 + $0x78] sm:$0xff] %vm597_vm0, %v596_v15 }
  0x41 PF: > { %v2418_v16 = vld [vmem:[#allocation2] sm:$0xff]  ;;  %v2420_v17 = vld [vmem:[#allocation2 + $0x8] sm:$0xff]  ;;  %vm1082_vm1 = vcmask 261120   ;;  %v2192_v21 = vmov 0.0   ;;  %v2082_v43 = vld [vmem:[%s2636_s3 + $0x10] sm:$0xff]   ;;  %vm1267_vm2 = vcmask 523264  }
  0x42   : > { %v2422_v18 = vld [vmem:[#allocation2 + $0x10] sm:$0xff]  ;;  %v630_v19 = vpack.c.bf16 %v2420_v17, %v2418_v16  ;;  %v2426_v20 = vld [vmem:[#allocation2 + $0x18] sm:$0xff]  ;;  %v2080_v36 = vld [vmem:[%s2636_s3] sm:$0xff]   ;;  %p1787_p6 = scmp.ne.s32.totalorder %s2282_s19, 1 }
  0x43   : > { %1440 = vst.msk [vmem:[#allocation2 + $0x10] sm:$0xff] %vm1082_vm1, %v2192_v21  ;;  %v2429_v22 = vld [vmem:[#allocation2 + $0x20] sm:$0xff]  ;;  %v2431_v23 = vld [vmem:[#allocation2 + $0x28] sm:$0xff]  ;;  %v631_v24 = vpack.c.bf16 %v2426_v20, %v2422_v18  ;;  %1441 = vst.msk [vmem:[#allocation2 + $0x18] sm:$0xff] %vm1082_vm1, %v2192_v21  ;;  %1921 = vmatprep.mubr.bf16.mxu0 %v2080_v36  ;;  %vm2194_vm3 = vmmov (!%p1787_p6), 0   ;;  %s1792_s29 = sld [smem:[#allocation6 + $0x1]] (!%p1787_p6) }
  0x44   : > { %1442 = vst.msk [vmem:[#allocation2 + $0x20] sm:$0xff] %vm1082_vm1, %v2192_v21  ;;  %1443 = vst.msk [vmem:[#allocation2 + $0x28] sm:$0xff] %vm1082_vm1, %v2192_v21  ;;  %v2438_v25 = vld [vmem:[#allocation2 + $0x30] sm:$0xff]  ;;  %v2440_v26 = vld [vmem:[#allocation2 + $0x38] sm:$0xff]  ;;  %1905 = vmatprep.subr.bf16.mxu0 %v630_v19  ;;  %v632_v34 = vpack.c.bf16 %v2431_v23, %v2429_v22  ;;  %s1602_s21 = sld [smem:[#allocation6]] (!%p1787_p6)  ;;  %s2668_s23 = sld [smem:[#allocation15_spill]] (!%p1787_p6) }
  0x45   : > { %v2442_v27 = vld [vmem:[#allocation2 + $0x40] sm:$0xff]  ;;  %1444 = vst.msk [vmem:[#allocation2 + $0x30] sm:$0xff] %vm1082_vm1, %v2192_v21  ;;  %1445 = vst.msk [vmem:[#allocation2 + $0x38] sm:$0xff] %vm1082_vm1, %v2192_v21  ;;  %v2446_v28 = vld [vmem:[#allocation2 + $0x48] sm:$0xff]  ;;  %1906 = vmatpush3.bf16.msra.mxu0 %v630_v19  ;;  %v633_v37 = vpack.c.bf16 %v2440_v26, %v2438_v25 }
  0x46   : > { %1446 = vst.msk [vmem:[#allocation2 + $0x40] sm:$0xff] %vm1082_vm1, %v2192_v21  ;;  %v2449_v29 = vld [vmem:[#allocation2 + $0x50] sm:$0xff]  ;;  %v2451_v30 = vld [vmem:[#allocation2 + $0x58] sm:$0xff]  ;;  %1447 = vst.msk [vmem:[#allocation2 + $0x48] sm:$0xff] %vm1082_vm1, %v2192_v21  ;;  %1907 = vmatprep.subr.bf16.mxu0 %v631_v24  ;;  %v634_v38 = vpack.c.bf16 %v2446_v28, %v2442_v27 }
  0x47   : > { %1448 = vst.msk [vmem:[#allocation2 + $0x50] sm:$0xff] %vm1082_vm1, %v2192_v21  ;;  %1449 = vst.msk [vmem:[#allocation2 + $0x58] sm:$0xff] %vm1082_vm1, %v2192_v21  ;;  %v2456_v31 = vld [vmem:[#allocation2 + $0x60] sm:$0xff]  ;;  %v2458_v32 = vld [vmem:[#allocation2 + $0x68] sm:$0xff]  ;;  %v635_v39 = vpack.c.bf16 %v2451_v30, %v2449_v29 }
  0x48   : > { %v2460_v33 = vld [vmem:[#allocation2 + $0x70] sm:$0xff]  ;;  %1450 = vst.msk [vmem:[#allocation2 + $0x60] sm:$0xff] %vm1082_vm1, %v2192_v21  ;;  %1451 = vst.msk [vmem:[#allocation2 + $0x68] sm:$0xff] %vm1082_vm1, %v2192_v21  ;;  %v2466_v35 = vld [vmem:[#allocation2 + $0x78] sm:$0xff]  ;;  %v636_v40 = vpack.c.bf16 %v2458_v32, %v2456_v31 }
  0x49   : > { %1452 = vst.msk [vmem:[#allocation2 + $0x70] sm:$0xff] %vm1082_vm1, %v2192_v21  ;;  %1453 = vst.msk [vmem:[#allocation2 + $0x78] sm:$0xff] %vm1082_vm1, %v2192_v21  ;;  %1908 = vmatpush3.bf16.msra.mxu0 %v631_v24  ;;  %v637_v41 = vpack.c.bf16 %v2466_v35, %v2460_v33  ;;  %v2081_v42 = vld [vmem:[%s2636_s3 + $0x8] sm:$0xff]   ;;  %v2083_v44 = vld [vmem:[%s2636_s3 + $0x18] sm:$0xff]  }
  0x4a   : > { %1909 = vmatprep.subr.bf16.mxu0 %v632_v34  ;;  %v2084_v45 = vld [vmem:[%s2636_s3 + $0x20] sm:$0xff]   ;;  %v2085_v46 = vld [vmem:[%s2636_s3 + $0x28] sm:$0xff]   ;;  %v2086_v47 = vld [vmem:[%s2636_s3 + $0x30] sm:$0xff]  }
  0x4b   : > { %v2087_v48 = vld [vmem:[%s2636_s3 + $0x38] sm:$0xff]   ;;  %v2088_v49 = vld [vmem:[%s2637_s4] sm:$0xff]   ;;  %v2097_v51 = vld [vmem:[%s2336_s27 + $0x8] sm:$0xff]  }
  0x4c   : > { %1953 = vmatprep.mubr.bf16.mxu1 %v2088_v49  ;;  %v2096_v50 = vld [vmem:[%s2336_s27] sm:$0xff]   ;;  %v1832_v52 = vld [vmem:[%s2331_s24 + $0x8] sm:$0xff]   ;;  %v1834_v63 = vld [vmem:[%s2331_s24 + $0x18] sm:$0xff]  }
  0x4d   : > { %1910 = vmatpush3.bf16.msra.mxu0 %v632_v34  ;;  %v1801_v53 = vld [vmem:[%s2331_s24] sm:$0xff]   ;;  %v1806_v54 = vunpack.c.l.bf16 %v1832_v52  ;;  %v1807_v56 = vunpack.c.h.bf16 %v1832_v52  ;;  %v1833_v2 = vld [vmem:[%s2331_s24 + $0x10] sm:$0xff]   ;;  %v1814_v6 = vunpack.c.l.bf16 %v1834_v63  ;;  %v1815_v11 = vunpack.c.h.bf16 %v1834_v63  ;;  %v1836_v34 = vld [vmem:[%s2331_s24 + $0x28] sm:$0xff]  }
  0x4e   : > { %1911 = vmatprep.subr.bf16.mxu0 %v633_v37  ;;  %v1802_v55 = vunpack.c.l.bf16 %v1801_v53  ;;  %v1803_v58 = vunpack.c.h.bf16 %v1801_v53  ;;  %v1810_v9 = vunpack.c.l.bf16 %v1833_v2  ;;  %v1811_v14 = vunpack.c.h.bf16 %v1833_v2 }
  0x51   : > { %1912 = vmatpush3.bf16.msra.mxu0 %v633_v37 }
  0x52   : > { %1913 = vmatprep.subr.bf16.mxu0 %v634_v38 }
  0x55   : > { %1914 = vmatpush3.bf16.msra.mxu0 %v634_v38  ;;  %v1835_v38 = vld [vmem:[%s2331_s24 + $0x20] sm:$0xff]  }
  0x56   : > { %1915 = vmatprep.subr.bf16.mxu0 %v635_v39 }
  0x59   : > { %1916 = vmatpush3.bf16.msra.mxu0 %v635_v39 }
  0x5a   : > { %1917 = vmatprep.subr.bf16.mxu0 %v636_v40 }
  0x5d   : > { %1918 = vmatpush3.bf16.msra.mxu0 %v636_v40 }
  0x5e   : > { %1919 = vmatprep.subr.bf16.mxu0 %v637_v41 }
  0x61   : > { %1920 = vmatpush3.bf16.msra.mxu0 %v637_v41 }
  0x62   : > { %1969 = vmatprep.subr.bf16.mxu0 %v2096_v50 }
  0x64   : > { %1922 = vmatmul.mubr.bf16.vlgmr.msra.gmra.mrb[0].mxu0 %v2081_v42  ;;  %v1822_v42 = vunpack.c.l.bf16 %v1836_v34 }
  0x65   : > { %1925 = vmatprep.mubr.bf16.mxu0 %v2082_v43  ;;  %1970 = vmatpush3.bf16.msra.mxu0 %v2096_v50  ;;  %v1819_v50 = vunpack.c.h.bf16 %v1835_v38 }
  0x66   : > { %1971 = vmatprep.subr.bf16.mxu0 %v2097_v51 }
  0x69   : > { %1972 = vmatpush3.bf16.msra.mxu0 %v2097_v51 }
  0x6c   : > { %1926 = vmatmul.mubr.bf16.gmra.mrb[4].mxu0 %v2083_v44 }
  0x6d   : > { %1929 = vmatprep.mubr.bf16.mxu0 %v2084_v45  ;;  %v1818_v45 = vunpack.c.l.bf16 %v1835_v38  ;;  %v2091_v38 = vld [vmem:[%s2637_s4 + $0x18] sm:$0xff]  }
  0x74   : > { %1930 = vmatmul.mubr.bf16.gmra.mrb[8].mxu0 %v2085_v46 }
  0x75   : > { %1933 = vmatprep.mubr.bf16.mxu0 %v2086_v47  ;;  %v1823_v47 = vunpack.c.h.bf16 %v1836_v34 }
  0x7c   : > { %1934 = vmatmul.mubr.bf16.gmra.mrb[12].mxu0 %v2087_v48 }
 0x137   : > { %v1923_v57 = vpop.f32.mrb[0].mxu0 }
 0x138   : > { %v777_v59 = vadd.f32 %v1923_v57, %v1806_v54  ;;  %v768_v60 = vpop.f32.mrb[1].mxu0 }
 0x139   : > { %v769_v61 = vadd.f32 %v1802_v55, %v768_v60  ;;  %v1924_v62 = vpop.f32.mrb[2].mxu0  ;;  %v1838_v55 = vld [vmem:[%s2331_s24 + $0x38] sm:$0xff]  }
 0x13a   : > { %v780_v0 = vadd.f32 %v1924_v62, %v1807_v56  ;;  %v771_v1 = vpop.f32.mrb[3].mxu0  ;;  %v833_v4 = vmax.f32 %v777_v59, 0.0  ;;  %v1830_v62 = vunpack.c.l.bf16 %v1838_v55 }
 0x13b   : > { %v772_v3 = vadd.f32 %v1803_v58, %v771_v1  ;;  %v831_v7 = vmax.f32 %v769_v61, 0.0  ;;  %v1837_v58 = vld [vmem:[%s2331_s24 + $0x30] sm:$0xff]   ;;  %s1016_s24 = sld [smem:[#allocation3 + %s2282_s19]] }
 0x13c   : > { %v834_v5 = vmax.f32 %v780_v0, 0.0  ;;  %v1826_v1 = vunpack.c.l.bf16 %v1837_v58 }
 0x13d   : > { %v832_v8 = vmax.f32 %v772_v3, 0.0  ;;  %v1831_v3 = vunpack.c.h.bf16 %v1838_v55 }
 0x13e   : > { %v864_v10 = vpack.c.bf16 %v834_v5, %v833_v4 }
 0x13f   : > { %v1927_v12 = vpop.f32.mrb[4].mxu0  ;;  %v863_v13 = vpack.c.bf16 %v832_v8, %v831_v7 }
 0x140   : > { %v793_v15 = vadd.f32 %v1927_v12, %v1814_v6  ;;  %v784_v19 = vpop.f32.mrb[5].mxu0  ;;  %v1827_v6 = vunpack.c.h.bf16 %v1837_v58 }
 0x141   : > { %v785_v21 = vadd.f32 %v1810_v9, %v784_v19  ;;  %v1928_v24 = vpop.f32.mrb[6].mxu0  ;;  %1937 = vmatprep.subr.bf16.mxu1 %v863_v13  ;;  %s1017_s27 = sadd.f32 1.0, %s1016_s24 }
 0x142   : > { %v796_v36 = vadd.f32 %v1928_v24, %v1815_v11  ;;  %v787_v37 = vpop.f32.mrb[7].mxu0  ;;  %1938 = vmatpush3.bf16.msra.mxu1 %v863_v13  ;;  %v837_v40 = vmax.f32 %v793_v15, 0.0 }
 0x143   : > { %v788_v39 = vadd.f32 %v1811_v14, %v787_v37  ;;  %1939 = vmatprep.subr.bf16.mxu1 %v864_v10  ;;  %v835_v43 = vmax.f32 %v785_v21, 0.0  ;;  %v2090_v37 = vld [vmem:[%s2637_s4 + $0x10] sm:$0xff]  }
 0x144   : > { %v838_v41 = vmax.f32 %v796_v36, 0.0  ;;  %v2089_v36 = vld [vmem:[%s2637_s4 + $0x8] sm:$0xff]  }
 0x145   : > { %v836_v44 = vmax.f32 %v788_v39, 0.0  ;;  %v2092_v39 = vld [vmem:[%s2637_s4 + $0x20] sm:$0xff]  }
 0x146   : > { %v866_v46 = vpack.c.bf16 %v838_v41, %v837_v40  ;;  %1940 = vmatpush3.bf16.msra.mxu1 %v864_v10  ;;  %v2093_v40 = vld [vmem:[%s2637_s4 + $0x28] sm:$0xff]   ;;  %v2094_v41 = vld [vmem:[%s2637_s4 + $0x30] sm:$0xff]  }
 0x147   : > { %v865_v48 = vpack.c.bf16 %v836_v44, %v835_v43  ;;  %v1931_v49 = vpop.f32.mrb[8].mxu0  ;;  %v2098_v43 = vld [vmem:[%s2346_s18] sm:$0xff]   ;;  %v2099_v44 = vld [vmem:[%s2346_s18 + $0x8] sm:$0xff]  }
 0x148   : > { %v809_v51 = vadd.f32 %v1931_v49, %v1822_v42  ;;  %v800_v52 = vpop.f32.mrb[9].mxu0  ;;  %v2095_v42 = vld [vmem:[%s2637_s4 + $0x38] sm:$0xff]  }
 0x149   : > { %v801_v53 = vadd.f32 %v1818_v45, %v800_v52  ;;  %v1932_v54 = vpop.f32.mrb[10].mxu0  ;;  %1941 = vmatprep.subr.bf16.mxu1 %v865_v48  ;;  %v2100_v45 = vld [vmem:[%s2346_s18 + $0x10] sm:$0xff]  }
 0x14a   : > { %v812_v56 = vadd.f32 %v1932_v54, %v1823_v47  ;;  %v803_v57 = vpop.f32.mrb[11].mxu0  ;;  %1942 = vmatpush3.bf16.msra.mxu1 %v865_v48  ;;  %v841_v60 = vmax.f32 %v809_v51, 0.0 }
 0x14b   : > { %v804_v59 = vadd.f32 %v1819_v50, %v803_v57  ;;  %1943 = vmatprep.subr.bf16.mxu1 %v866_v46  ;;  %v839_v63 = vmax.f32 %v801_v53, 0.0 }
 0x14c   : > { %v842_v61 = vmax.f32 %v812_v56, 0.0 }
 0x14d   : > { %v840_v0 = vmax.f32 %v804_v59, 0.0 }
 0x14e   : > { %v868_v2 = vpack.c.bf16 %v842_v61, %v841_v60  ;;  %1944 = vmatpush3.bf16.msra.mxu1 %v866_v46  ;;  %v1018_v46 = vstv %s1017_s27 }
 0x14f   : > { %v867_v4 = vpack.c.bf16 %v840_v0, %v839_v63  ;;  %v1935_v5 = vpop.f32.mrb[12].mxu0  ;;  %v1021_v47 = vmul.f32 %v1018_v46, %v2422_v18  ;;  %v1022_v48 = vmul.f32 %v1018_v46, %v2426_v20  ;;  %v1019_v50 = vmul.f32 %v1018_v46, %v2418_v16 }
 0x150   : > { %v825_v7 = vadd.f32 %v1935_v5, %v1830_v62  ;;  %v816_v8 = vpop.f32.mrb[13].mxu0  ;;  %v1020_v51 = vmul.f32 %v1018_v46, %v2420_v17  ;;  %v1025_v61 = vmul.f32 %v1018_v46, %v2438_v25  ;;  %v1026_v18 = vmul.f32 %v1018_v46, %v2440_v26 }
 0x151   : > { %v817_v9 = vadd.f32 %v1826_v1, %v816_v8  ;;  %v1936_v10 = vpop.f32.mrb[14].mxu0  ;;  %1945 = vmatprep.subr.bf16.mxu1 %v867_v4  ;;  %v1023_v16 = vmul.f32 %v1018_v46, %v2429_v22  ;;  %v1024_v17 = vmul.f32 %v1018_v46, %v2431_v23  ;;  %v1029_v26 = vmul.f32 %v1018_v46, %v2449_v29 }
 0x152   : > { %v828_v11 = vadd.f32 %v1936_v10, %v1831_v3  ;;  %v819_v12 = vpop.f32.mrb[15].mxu0  ;;  %1946 = vmatpush3.bf16.msra.mxu1 %v867_v4  ;;  %v845_v14 = vmax.f32 %v825_v7, 0.0  ;;  %v1027_v22 = vmul.f32 %v1018_v46, %v2442_v27  ;;  %v1028_v23 = vmul.f32 %v1018_v46, %v2446_v28 }
 0x153   : > { %v820_v13 = vadd.f32 %v1827_v6, %v819_v12  ;;  %1947 = vmatprep.subr.bf16.mxu1 %v868_v2  ;;  %v843_v19 = vmax.f32 %v817_v9, 0.0  ;;  %v1030_v6 = vmul.f32 %v1018_v46, %v2451_v30  ;;  %v1033_v30 = vmul.f32 %v1018_v46, %v2460_v33 }
 0x154   : > { %v846_v15 = vmax.f32 %v828_v11, 0.0  ;;  %v1031_v27 = vmul.f32 %v1018_v46, %v2456_v31  ;;  %v1032_v28 = vmul.f32 %v1018_v46, %v2458_v32  ;;  %v1763_v31 = vld [vmem:[%s567_s30] ss:$0 sm:$0xff] }
 0x155   : > { %v844_v21 = vmax.f32 %v820_v13, 0.0 }
 0x156   : > { %v870_v24 = vpack.c.bf16 %v846_v15, %v845_v14  ;;  %1948 = vmatpush3.bf16.msra.mxu1 %v868_v2 }
 0x157   : > { %v869_v34 = vpack.c.bf16 %v844_v21, %v843_v19  ;;  %v1034_v19 = vmul.f32 %v1018_v46, %v2466_v35 }
 0x159   : > { %1949 = vmatprep.subr.bf16.mxu1 %v869_v34 }
 0x15a   : > { %1950 = vmatpush3.bf16.msra.mxu1 %v869_v34 }
 0x15b   : > { %1951 = vmatprep.subr.bf16.mxu1 %v870_v24 }
 0x15e   : > { %1952 = vmatpush3.bf16.msra.mxu1 %v870_v24 }
 0x15f   : > { %1989 = vmatprep.subr.bf16.mxu1 %v2098_v43 }
 0x161   : > { %1954 = vmatmul.mubr.bf16.vlgmr.msra.gmra.mrb[0].mxu1 %v2089_v36 }
 0x162   : > { %1957 = vmatprep.mubr.bf16.mxu1 %v2090_v37  ;;  %1990 = vmatpush3.bf16.msra.mxu1 %v2098_v43 }
 0x163   : > { %1991 = vmatprep.subr.bf16.mxu1 %v2099_v44 }
 0x166   : > { %1992 = vmatpush3.bf16.msra.mxu1 %v2099_v44 }
 0x167   : > { %1993 = vmatprep.subr.bf16.mxu1 %v2100_v45 }
 0x169   : > { %1958 = vmatmul.mubr.bf16.gmra.mrb[4].mxu1 %v2091_v38 }
 0x16a   : > { %1961 = vmatprep.mubr.bf16.mxu1 %v2092_v39  ;;  %1994 = vmatpush3.bf16.msra.mxu1 %v2100_v45 }
 0x171   : > { %1962 = vmatmul.mubr.bf16.gmra.mrb[8].mxu1 %v2093_v40 }
 0x172   : > { %1965 = vmatprep.mubr.bf16.mxu1 %v2094_v41  ;;  %v2101_v41 = vld [vmem:[%s2346_s18 + $0x18] sm:$0xff]  }
 0x173   : > { %1995 = vmatprep.subr.bf16.mxu1 %v2101_v41 }
 0x174   : > { %1996 = vmatpush3.bf16.msra.mxu1 %v2101_v41 }
 0x179   : > { %1966 = vmatmul.mubr.bf16.gmra.mrb[12].mxu1 %v2095_v42 }
 0x234   : > { %v1955_v49 = vpop.f32.mrb[0].mxu1 }
 0x235   : > { %v953_v52 = vpop.f32.mrb[1].mxu1  ;;  %v1037_v54 = vadd.f32 %v1955_v49, %v1021_v47 }
 0x236   : > { %v1956_v53 = vpop.f32.mrb[2].mxu1  ;;  %v1035_v57 = vadd.f32 %v1019_v50, %v953_v52 }
 0x237   : > { %v1038_v55 = vadd.f32 %v1956_v53, %v1022_v48  ;;  %v956_v56 = vpop.f32.mrb[3].mxu1 }
 0x238   : > { %v1036_v58 = vadd.f32 %v1020_v51, %v956_v56 }
 0x239   : > { %v1052_v59 = vpack.c.bf16 %v1038_v55, %v1037_v54 }
 0x23a   : > { %v1051_v60 = vpack.c.bf16 %v1036_v58, %v1035_v57 }
 0x23c   : > { %v1959_v62 = vpop.f32.mrb[4].mxu1  ;;  %1973 = vmatprep.mubr.msk.bf16.mxu0 %vm1082_vm1, %v1051_v60 }
 0x23d   : > { %v969_v20 = vpop.f32.mrb[5].mxu1  ;;  %1974 = vmatmul.mubr.msk.bf16.vlgmr.msra.gmra.mrb[16].mxu0 %vm1082_vm1, %v1052_v59  ;;  %v1041_v0 = vadd.f32 %v1959_v62, %v1025_v61 }
 0x23e   : > { %v1960_v63 = vpop.f32.mrb[6].mxu1  ;;  %v1039_v3 = vadd.f32 %v1023_v16, %v969_v20 }
 0x23f   : > { %v1042_v1 = vadd.f32 %v1960_v63, %v1026_v18  ;;  %v972_v2 = vpop.f32.mrb[7].mxu1 }
 0x240   : > { %v1040_v4 = vadd.f32 %v1024_v17, %v972_v2 }
 0x241   : > { %v1054_v5 = vpack.c.bf16 %v1042_v1, %v1041_v0 }
 0x242   : > { %v1053_v25 = vpack.c.bf16 %v1040_v4, %v1039_v3 }
 0x244   : > { %v1963_v7 = vpop.f32.mrb[8].mxu1  ;;  %1977 = vmatprep.mubr.msk.bf16.mxu0 %vm1082_vm1, %v1053_v25 }
 0x245   : > { %v985_v8 = vpop.f32.mrb[9].mxu1  ;;  %1978 = vmatmul.mubr.msk.bf16.gmra.mrb[20].mxu0 %vm1082_vm1, %v1054_v5  ;;  %v1045_v10 = vadd.f32 %v1963_v7, %v1029_v26 }
 0x246   : > { %v1964_v9 = vpop.f32.mrb[10].mxu1  ;;  %v1043_v13 = vadd.f32 %v1027_v22, %v985_v8 }
 0x247   : > { %v1046_v11 = vadd.f32 %v1964_v9, %v1030_v6  ;;  %v988_v12 = vpop.f32.mrb[11].mxu1 }
 0x248   : > { %v1044_v14 = vadd.f32 %v1028_v23, %v988_v12 }
 0x249   : > { %v1056_v15 = vpack.c.bf16 %v1046_v11, %v1045_v10 }
 0x24a   : > { %v1055_v29 = vpack.c.bf16 %v1044_v14, %v1043_v13 }
 0x24c   : > { %v1967_v21 = vpop.f32.mrb[12].mxu1  ;;  %1981 = vmatprep.mubr.msk.bf16.mxu0 %vm1082_vm1, %v1055_v29 }
 0x24d   : > { %v1001_v24 = vpop.f32.mrb[13].mxu1  ;;  %1982 = vmatmul.mubr.msk.bf16.gmra.mrb[24].mxu0 %vm1082_vm1, %v1056_v15  ;;  %v1049_v36 = vadd.f32 %v1967_v21, %v1033_v30 }
 0x24e   : > { %v1968_v34 = vpop.f32.mrb[14].mxu1  ;;  %v1047_v39 = vadd.f32 %v1031_v27, %v1001_v24 }
 0x24f   : > { %v1050_v37 = vadd.f32 %v1968_v34, %v1034_v19  ;;  %v1004_v38 = vpop.f32.mrb[15].mxu1 }
 0x250   : > { %v1048_v33 = vadd.f32 %v1032_v28, %v1004_v38 }
 0x251   : > { %v1058_v40 = vpack.c.bf16 %v1050_v37, %v1049_v36  ;;  %v1774_v37 = vld [vmem:[%s575_s20] ss:$0 sm:$0xff] }
 0x252   : > { %v1057_v35 = vpack.c.bf16 %v1048_v33, %v1047_v39 }
 0x254   : > { %1985 = vmatprep.mubr.msk.bf16.mxu0 %vm1082_vm1, %v1057_v35 }
 0x255   : > { %1986 = vmatmul.mubr.msk.bf16.gmra.mrb[28].mxu0 %vm1082_vm1, %v1058_v40 }
 0x310   : > { %v1975_v32 = vpop.f32.mrb[16].mxu0 }
 0x311   : > { %v1150_v42 = vadd.f32 %v1975_v32, %v1763_v31  ;;  %v1141_v43 = vpop.f32.mrb[17].mxu0 }
 0x312   : > { %v1142_v44 = vadd.f32 %v1763_v31, %v1141_v43  ;;  %v1976_v45 = vpop.f32.mrb[18].mxu0 }
 0x313   : > { %v1153_v46 = vadd.f32 %v1976_v45, %v1763_v31  ;;  %v1144_v47 = vpop.f32.mrb[19].mxu0  ;;  %v1206_v49 = vmax.f32 %v1150_v42, 0.0 }
 0x314   : > { %v1145_v48 = vadd.f32 %v1763_v31, %v1144_v47  ;;  %v1204_v51 = vmax.f32 %v1142_v44, 0.0 }
 0x315   : > { %v1207_v50 = vmax.f32 %v1153_v46, 0.0 }
 0x316   : > { %v1205_v52 = vmax.f32 %v1145_v48, 0.0 }
 0x317   : > { %v1221_v53 = vpack.c.bf16 %v1207_v50, %v1206_v49 }
 0x318   : > { %v1220_v54 = vpack.c.bf16 %v1205_v52, %v1204_v51  ;;  %v1979_v55 = vpop.f32.mrb[20].mxu0 }
 0x319   : > { %v1166_v56 = vadd.f32 %v1979_v55, %v1763_v31  ;;  %v1157_v57 = vpop.f32.mrb[21].mxu0  ;;  %v2193_v55 = vmov (!%p1787_p6), 0.0  }
 0x31a   : > { %v1158_v58 = vadd.f32 %v1763_v31, %v1157_v57  ;;  %v1980_v59 = vpop.f32.mrb[22].mxu0  ;;  %1997 = vmatprep.mubr.msk.bf16.mxu1 %vm1267_vm2, %v1220_v54  ;;  %v1460_v54 = vld [vmem:[#allocation2 + $0x10] sm:$0xff] (!%p1787_p6)  ;;  %2013 = vmatprep.subr.bf16.mxu0 (!%p1787_p6), %v2193_v55  ;;  %v1461_v57 = vld [vmem:[#allocation2 + $0x18] sm:$0xff] (!%p1787_p6) }
 0x31b   : > { %v1169_v60 = vadd.f32 %v1980_v59, %v1763_v31  ;;  %v1160_v61 = vpop.f32.mrb[23].mxu0  ;;  %1998 = vmatmul.mubr.msk.bf16.vlgmr.msra.gmra.mrb[16].mxu1 %vm1267_vm2, %v1221_v53  ;;  %v1210_v62 = vmax.f32 %v1166_v56, 0.0  ;;  %2029 = vmatprep.mubr.msk.bf16.mxu0 (!%p1787_p6), %vm2194_vm3, %v2193_v55  ;;  %v1462_v59 = vld [vmem:[#allocation2 + $0x20] sm:$0xff] (!%p1787_p6) }
 0x31c   : > { %v1161_v18 = vadd.f32 %v1763_v31, %v1160_v61  ;;  %v1208_v17 = vmax.f32 %v1158_v58, 0.0  ;;  %2033 = vmatprep.subr.bf16.mxu1 (!%p1787_p6), %v2193_v55  ;;  %v1476_v58 = vpack.c.bf16 (!%p1787_p6), %v1461_v57, %v1460_v54  ;;  %v2102_v61 = vld [vmem:[%s2645_s12] sm:$0xff] (!%p1787_p6)  }
 0x31d   : > { %v1211_v16 = vmax.f32 %v1169_v60, 0.0  ;;  %v1463_v60 = vld [vmem:[#allocation2 + $0x28] sm:$0xff] (!%p1787_p6)  ;;  %2034 = vmatpush3.bf16.msra.mxu1 (!%p1787_p6), %v2102_v61 }
 0x31e   : > { %v1209_v20 = vmax.f32 %v1161_v18, 0.0  ;;  %v1477_v18 = vpack.c.bf16 (!%p1787_p6), %v1463_v60, %v1462_v59  ;;  %2035 = vmatprep.subr.bf16.mxu1 (!%p1787_p6), %v2193_v55 }
 0x31f   : > { %v1223_v63 = vpack.c.bf16 %v1211_v16, %v1210_v62  ;;  %v1464_v62 = vld [vmem:[#allocation2 + $0x30] sm:$0xff] (!%p1787_p6)  ;;  %v1465_v16 = vld [vmem:[#allocation2 + $0x38] sm:$0xff] (!%p1787_p6) }
 0x320   : > { %v1222_v0 = vpack.c.bf16 %v1209_v20, %v1208_v17  ;;  %v1983_v1 = vpop.f32.mrb[24].mxu0  ;;  %v1478_v17 = vpack.c.bf16 (!%p1787_p6), %v1465_v16, %v1464_v62  ;;  %v1466_v20 = vld [vmem:[#allocation2 + $0x40] sm:$0xff] (!%p1787_p6) }
 0x321   : > { %v1182_v2 = vadd.f32 %v1983_v1, %v1763_v31  ;;  %v1173_v3 = vpop.f32.mrb[25].mxu0  ;;  %v1468_v1 = vld [vmem:[#allocation2 + $0x50] sm:$0xff] (!%p1787_p6) }
 0x322   : > { %v1174_v4 = vadd.f32 %v1763_v31, %v1173_v3  ;;  %v1984_v5 = vpop.f32.mrb[26].mxu0  ;;  %2001 = vmatprep.mubr.msk.bf16.mxu1 %vm1267_vm2, %v1222_v0 }
 0x323   : > { %v1185_v25 = vadd.f32 %v1984_v5, %v1763_v31  ;;  %v1176_v26 = vpop.f32.mrb[27].mxu0  ;;  %2002 = vmatmul.mubr.msk.bf16.gmra.mrb[20].mxu1 %vm1267_vm2, %v1223_v63  ;;  %v1214_v7 = vmax.f32 %v1182_v2, 0.0  ;;  %v1467_v63 = vld [vmem:[#allocation2 + $0x48] sm:$0xff] (!%p1787_p6)  ;;  %v1469_v2 = vld [vmem:[#allocation2 + $0x58] sm:$0xff] (!%p1787_p6) }
 0x324   : > { %v1177_v6 = vadd.f32 %v1763_v31, %v1176_v26  ;;  %v1212_v23 = vmax.f32 %v1174_v4, 0.0  ;;  %v1479_v0 = vpack.c.bf16 (!%p1787_p6), %v1467_v63, %v1466_v20  ;;  %v1480_v3 = vpack.c.bf16 (!%p1787_p6), %v1469_v2, %v1468_v1  ;;  %v1470_v4 = vld [vmem:[#allocation2 + $0x60] sm:$0xff] (!%p1787_p6)  ;;  %v1471_v5 = vld [vmem:[#allocation2 + $0x68] sm:$0xff] (!%p1787_p6)  ;;  %v1472_v26 = vld [vmem:[#allocation2 + $0x70] sm:$0xff] (!%p1787_p6) }
 0x325   : > { %v1215_v22 = vmax.f32 %v1185_v25, 0.0  ;;  %v1481_v25 = vpack.c.bf16 (!%p1787_p6), %v1471_v5, %v1470_v4 }
 0x326   : > { %v1213_v8 = vmax.f32 %v1177_v6, 0.0  ;;  %v1473_v6 = vld [vmem:[#allocation2 + $0x78] sm:$0xff] (!%p1787_p6) }
 0x327   : > { %v1225_v9 = vpack.c.bf16 %v1215_v22, %v1214_v7  ;;  %v1482_v7 = vpack.c.bf16 (!%p1787_p6), %v1473_v6, %v1472_v26  ;;  %v1474_v22 = vld [vmem:[%s2643_s10] sm:$0xf] (!%p1787_p6) }
 0x328   : > { %v1224_v10 = vpack.c.bf16 %v1213_v8, %v1212_v23  ;;  %v1987_v11 = vpop.f32.mrb[28].mxu0  ;;  %v2103_v23 = vld [vmem:[%s2645_s12 + $0x8] sm:$0xff] (!%p1787_p6)   ;;  %v1523_v8 = vld [vmem:[%s2644_s11] sm:$0xff] (!%p1787_p6) }
 0x329   : > { %v1198_v12 = vadd.f32 %v1987_v11, %v1763_v31  ;;  %v1189_v13 = vpop.f32.mrb[29].mxu0  ;;  %2036 = vmatpush3.bf16.msra.mxu1 (!%p1787_p6), %v2103_v23 }
 0x32a   : > { %v1190_v14 = vadd.f32 %v1763_v31, %v1189_v13  ;;  %v1988_v15 = vpop.f32.mrb[30].mxu0  ;;  %2005 = vmatprep.mubr.msk.bf16.mxu1 %vm1267_vm2, %v1224_v10 }
 0x32b   : > { %v1201_v29 = vadd.f32 %v1988_v15, %v1763_v31  ;;  %v1192_v30 = vpop.f32.mrb[31].mxu0  ;;  %2006 = vmatmul.mubr.msk.bf16.gmra.mrb[24].mxu1 %vm1267_vm2, %v1225_v9  ;;  %v1218_v21 = vmax.f32 %v1198_v12, 0.0  ;;  %v1788_v15 = vld [vmem:[%s2646_s13] ss:$0 sm:$0xff] (!%p1787_p6) }
 0x32c   : > { %v1193_v19 = vadd.f32 %v1763_v31, %v1192_v30  ;;  %v1216_v28 = vmax.f32 %v1190_v14, 0.0  ;;  %v1593_v30 = vstv (!%p1787_p6), %s1792_s29 }
 0x32d   : > { %v1219_v27 = vmax.f32 %v1201_v29, 0.0 }
 0x32e   : > { %v1217_v24 = vmax.f32 %v1193_v19, 0.0 }
 0x32f   : > { %v1227_v34 = vpack.c.bf16 %v1219_v27, %v1218_v21 }
 0x330   : > { %v1226_v36 = vpack.c.bf16 %v1217_v24, %v1216_v28 }
 0x332   : > { %2009 = vmatprep.mubr.msk.bf16.mxu1 %vm1267_vm2, %v1226_v36 }
 0x333   : > { %2010 = vmatmul.mubr.msk.bf16.gmra.mrb[28].mxu1 %vm1267_vm2, %v1227_v34 }
 0x334   : > { %2037 = vmatprep.mubr.msk.bf16.mxu1 (!%p1787_p6), %vm2194_vm3, %v2193_v55 }
 0x3ee   : > { %v1999_v38 = vpop.f32.mrb[16].mxu1 }
 0x3ef   : > { %v1326_v39 = vpop.f32.mrb[17].mxu1 }
 0x3f0   : > { %v1327_v33 = vadd.f32 %v1774_v37, %v1326_v39  ;;  %v2000_v40 = vpop.f32.mrb[18].mxu1  ;;  %v1601_v39 = vld [vmem:[%s2668_s23] sm:$0xff] (!%p1787_p6) }
 0x3f1   : > { %v1329_v35 = vpop.f32.mrb[19].mxu1 }
 0x3f2   : > { %1438 = vst.msk [vmem:[#allocation2] sm:$0xff] %vm1082_vm1, %v1327_v33  ;;  %v1330_v41 = vadd.f32 %v1774_v37, %v1329_v35  ;;  %v1603_v33 = vstv (!%p1787_p6), %s1602_s21 }
 0x3f3   : > { %v1605_v40 = vmul.f32 (!%p1787_p6), %v1603_v33, %v1601_v39 }
 0x3f4   : > { %1439 = vst.msk [vmem:[#allocation2 + $0x8] sm:$0xff] %vm1082_vm1, %v1330_v41 }
 0x3f6   : > { %v2003_v31 = vpop.f32.mrb[20].mxu1 }
 0x3f7   : > { %v1342_v32 = vpop.f32.mrb[21].mxu1 }
 0x3f8   : > { %v2004_v42 = vpop.f32.mrb[22].mxu1 }
 0x3f9   : > { %v1345_v43 = vpop.f32.mrb[23].mxu1  ;;  %v1458_v52 = vld [vmem:[#allocation2] sm:$0xff] (!%p1787_p6) }
 0x3fb   : > { %v1459_v53 = vld [vmem:[#allocation2 + $0x8] sm:$0xff] (!%p1787_p6) }
 0x3fc   : > { %v1475_v56 = vpack.c.bf16 (!%p1787_p6), %v1459_v53, %v1458_v52 }
 0x3fe   : > { %v2007_v44 = vpop.f32.mrb[24].mxu1  ;;  %2014 = vmatpush3.bf16.msra.mxu0 (!%p1787_p6), %v1475_v56 }
 0x3ff   : > { %v1358_v45 = vpop.f32.mrb[25].mxu1  ;;  %2015 = vmatprep.subr.bf16.mxu0 (!%p1787_p6), %v2193_v55 }
 0x400   : > { %v2008_v46 = vpop.f32.mrb[26].mxu1 }
 0x401   : > { %v1361_v47 = vpop.f32.mrb[27].mxu1 }
 0x402   : > { %2016 = vmatpush3.bf16.msra.mxu0 (!%p1787_p6), %v1476_v58 }
 0x403   : > { %1457 = sbr.rel (%p1787_p6) target bundleno = 1553 (0x611), region = 96  ;;  %2017 = vmatprep.subr.bf16.mxu0 (!%p1787_p6), %v2193_v55 }
 0x406   : > { %v2011_v48 = vpop.f32.mrb[28].mxu1  ;;  %2018 = vmatpush3.bf16.msra.mxu0 (!%p1787_p6), %v1477_v18 }
 0x407   : > { %v1374_v49 = vpop.f32.mrb[29].mxu1  ;;  %2019 = vmatprep.subr.bf16.mxu0 (!%p1787_p6), %v2193_v55 }
 0x408   : > { %v2012_v50 = vpop.f32.mrb[30].mxu1 }
 0x409   : > { %v1377_v51 = vpop.f32.mrb[31].mxu1 }
 0x40a   : > { %2020 = vmatpush3.bf16.msra.mxu0 %v1478_v17 }
 0x40b   : > { %2021 = vmatprep.subr.bf16.mxu0 %v2193_v55 }
 0x40e   : > { %2022 = vmatpush3.bf16.msra.mxu0 %v1479_v0 }
 0x40f   : > { %2023 = vmatprep.subr.bf16.mxu0 %v2193_v55 }
 0x412   : > { %2024 = vmatpush3.bf16.msra.mxu0 %v1480_v3 }
 0x413   : > { %2025 = vmatprep.subr.bf16.mxu0 %v2193_v55 }
 0x416   : > { %2026 = vmatpush3.bf16.msra.mxu0 %v1481_v25 }
 0x417   : > { %2027 = vmatprep.subr.bf16.mxu0 %v2193_v55 }
 0x41a   : > { %2028 = vmatpush3.bf16.msra.mxu0 %v1482_v7 }
 0x41d   : > { %2030 = vmatmul.mubr.bf16.vlgmr.msra.gmra.mrb[0].mxu0 %v1474_v22 }
 0x4f0   : > { %v1517_v9 = vpop.f32.mrb[0].mxu0 }
 0x4f1   : > { %v1524_v10 = vmul.f32 %v1523_v8, %v1517_v9  ;;  %v2031_v11 = vpop.f32.mrb[1].mxu0 }
 0x4f2   : > { %v1520_v12 = vpop.f32.mrb[2].mxu0 }
 0x4f3   : > { %v1525_v13 = vpack.c.bf16 %v1524_v10, %v1524_v10  ;;  %v2032_v14 = vpop.f32.mrb[3].mxu0 }
 0x4f5   : > { %2038 = vmatmul.mubr.msk.bf16.vlgmr.msra.gmra.mrb[0].mxu1 %vm1082_vm1, %v1525_v13 }
 0x5c8   : > { %v1586_v29 = vpop.f32.mrb[0].mxu1 }
 0x5c9   : > { %v1587_v19 = vadd.f32 %v1788_v15, %v1586_v29  ;;  %v2039_v21 = vpop.f32.mrb[1].mxu1 }
 0x5ca   : > { %v1589_v27 = vpop.f32.mrb[2].mxu1 }
 0x5cb   : > { %v1594_v28 = vmul.f32 %v1593_v30, %v1587_v19  ;;  %v2040_v24 = vpop.f32.mrb[3].mxu1 }
 0x5cd   : > { %v1595_v34 = vsub.f32 0.0, %v1594_v28 }
 0x5cf   : > { %v1596_v36 = vmul.f32 1.442695, %v1595_v34 }
 0x5d1   : > { %2104 = vpow2.f32 %v1596_v36 }
 0x5db   : > { %v2105_v37 = vpop.eup %2104 }
 0x5dc   : > { %v1598_v38 = vadd.f32 1.0, %v2105_v37 }
 0x5de   : > { %2106 = vrcp.f32 %v1598_v38 }
 0x5e8   : > { %v2107_v35 = vpop.eup %2106 }
 0x5e9   : > { %v1604_v41 = vmul.f32 %v2107_v35, %v1603_v33 }
 0x5eb   : > { %v1606_v31 = vmax.f32 %v1604_v41, %v1605_v40 }
 0x5ed   : > { %v1607_v32 = vsub.f32 %v1604_v41, %v1606_v31  ;;  %v1610_v42 = vsub.f32 %v1605_v40, %v1606_v31 }
 0x5ef   : > { %v1608_v43 = vmul.f32 1.442695, %v1607_v32  ;;  %v1611_v44 = vmul.f32 1.442695, %v1610_v42 }
 0x5f1   : > { %2108 = vpow2.f32 %v1608_v43 }
 0x5f2   : > { %2110 = vpow2.f32 %v1611_v44 }
 0x5fb   : > { %v2109_v45 = vpop.eup %2108 }
 0x5fc   : > { %v2111_v46 = vpop.eup %2110 }
 0x5fd   : > { %v1613_v47 = vadd.f32 %v2111_v46, %v2109_v45 }
 0x5ff   : > { %2112 = vrcp.f32 %v1613_v47 }
 0x609   : > { %v2113_v48 = vpop.eup %2112 }
 0x60a   : > { %v1616_v49 = vmul.f32 %v2113_v48, %v2109_v45  ;;  %v1618_v50 = vmul.f32 %v2113_v48, %v2111_v46 }
 0x60c   : > { %v1617_v51 = vmul.f32 %v2107_v35, %v1616_v49  ;;  %v1619_v52 = vmul.f32 %v1618_v50, %v1601_v39 }
 0x60e   : > { %v1620_v53 = vadd.f32 %v1619_v52, %v1617_v51 }
 0x610   : > { %1621 = vst [vmem:[#allocation8] sm:$0xff] %v1620_v53 }
 0x611 PF: > { %p2064_p13 = scmp.eq.s32.totalorder %s2282_s19, 1  ;;  %s2195_s25 = smov [#allocation8]  }
 0x612   : > { %s1629_s18 = sshll.u32 %s2195_s25, 4  ;;  %s1630_s18 = int_to_ptr.vmem [resolvable:$true] %s1629_s18 }
 0x613   : > { %s2144_s30 = scalar_lea.vmem %s1630_s18, 128  ;;  %p2151_p7 = scmp.lt.s32.totalorder %s1630_s18, %s1630_s18 }
 0x614   : > { %p2145_p0 = scmp.ne.s32.totalorder %s1630_s18, %s2144_s30  ;;  %p2152_p9 = scmp.lt.s32.totalorder %s2144_s30, %s2144_s30 }
 0x616   : > { %p2146_p1 = pnand %p2145_p0, %p2064_p13  ;;  %p2153_p10 = por %p2152_p9, %p2151_p7 }
 0x618   : > { %p2147_p5 = pneg %p2146_p1 }
 0x61a   : > { %p2154_p11 = pnand %p2153_p10, %p2147_p5 }
 0x61c   : > { %2157 = shalt.err (!%p2154_p11)
}
 0x61d   : > { %s2669_s26 = sld [smem:[#allocation16_spill]] }
 0x623   : > { %s2158_s0 = scalar_lea.hbm %s2669_s26, 128 }
 0x624   : > { %p2159_p12 = scmp.ne.s32.totalorder %s2669_s26, %s2158_s0  ;;  %p2164_p2 = scmp.lt.u32.totalorder %s2158_s0, %s2669_s26 }
 0x626   : > { %p2160_p8 = pnand %p2159_p12, %p2064_p13 }
 0x628   : > { %p2161_p3 = pneg %p2160_p8 }
 0x62a   : > { %p2166_p4 = pnand %p2164_p2, %p2161_p3 }
 0x62c   : > { %2169 = shalt.err (!%p2166_p4)
}
 0x62d   : > { %2050 = dma.vmem_to_hbm [thread:$0]  (%p2064_p13), %s1630_s18, 128, %s2669_s26, [#allocation4]  }
 0x62e   : > { %2183 = dma.done.wait (%p2064_p13), [#allocation4], 128  }
 0x62f   : > { %2185 = vsyncadd (%p2064_p13), [#allocation4], 4294967168 }
 0x630 PF: > { %s2670_s22 = sld [smem:[#allocation12_spill]] }
 0x636   : > { %s28_s18 = sadd.s32 1, %s2670_s22  }
 0x637   : > { %p25_p6 = scmp.ge.s32.totalorder %s28_s18, 4  }
 0x639   :  { %27 = sbr.rel (!%p25_p6) target bundleno = 8 (0x8), region = 136 }
 0x640   :  { %1642 = vsyncpa [#allocation4], 1 }
 0x641   :  { %1644 = vsyncpa [#allocation4 + $0x1], 1 }
 0x642   :  { %1645 = vsyncpa [#allocation5], 1 }
 0x643   :  { %1647 = vsyncpa [#allocation5 + $0x1], 1 }
 0x644   :  { %1648 = vsyncpa [#allocation7], 1 }

</bundles_post_ra>
